<compile_context>
chip_gen: v7x
topology: tpu7x:2x2x1
jax: 0.10.0
libtpu: 0.0.40
codegen_flags: <defaults>
</compile_context>

<pallas_src>
import jax
import jax.numpy as jnp
from jax.experimental import pallas as pl
from jax.experimental.pallas import tpu as pltpu

EPS = 1e-5  # nn.LayerNorm default


def _cnn_layernorm_kernel(x_ref, g_ref, b_ref, o_ref):
    # x_ref: (n_blk, F, t_blk); g_ref/b_ref: (F, 1)
    x = x_ref[...].astype(jnp.float32)
    mean = jnp.mean(x, axis=1, keepdims=True)                   # reduce over n_feats
    centered = x - mean
    var = jnp.mean(centered * centered, axis=1, keepdims=True)  # biased, matches torch
    inv = jax.lax.rsqrt(var + EPS)                              # (n, 1, t)
    g = g_ref[...].astype(jnp.float32)[None, :, :]              # (1, F, 1)
    b = b_ref[...].astype(jnp.float32)[None, :, :]
    # (centered * inv) is the only extra full-block f32 temp besides x itself.
    o_ref[...] = ((centered * inv) * g + b).astype(o_ref.dtype)


def _vmem_capacity_bytes():
    """Per-core VMEM capacity; conservative fallback if the query fails."""
    try:
        cap = int(pltpu.get_tpu_info().vmem_capacity_bytes)
        if cap > 0:
            return cap
    except Exception:
        pass
    return 64 * 1024 * 1024  # v7x per-TC size: safe lower bound everywhere


def _block_elem_budget(itemsize):
    """Max elements per block: account for double-buffered in+out pipeline
    buffers (input dtype) plus ~3 full-block f32 temporaries in the kernel."""
    usable = int(_vmem_capacity_bytes() * 0.6)   # headroom for compiler scratch
    per_elem = 4 * itemsize + 3 * 4              # (2 in + 2 out) bufs + f32 temps
    return max(8 * 128, usable // per_elem)


def _pick_tiles(N, F, T, itemsize):
    budget = _block_elem_budget(itemsize)
    if T < 128 or F * T <= budget:
        # Full-T block: one contiguous DMA segment per (n, :, :) slab.
        t_blk = T
    else:
        # Lane-dense multiple of 128, as large as the budget allows.
        t_blk = max(128, min(budget // (F * 128), T // 128) * 128)
    n_blk = min(N, max(1, budget // (F * t_blk)))
    # Give both v7x TensorCores work: ensure >= 2 total grid steps if possible.
    if pl.cdiv(N, n_blk) * pl.cdiv(T, t_blk) == 1 and N > 1:
        n_blk = pl.cdiv(N, 2)
    return n_blk, t_blk


def cnn_layer_norm(x, gamma, beta):
    """x: (B, C, F, T); gamma, beta: (F,). Returns (B, C, F, T)."""
    B, C, F, T = x.shape
    N = B * C
    x3 = x.reshape(N, F, T)                 # free view; (B,C) folded into one axis
    g2 = gamma.reshape(F, 1)
    b2 = beta.reshape(F, 1)

    itemsize = jnp.dtype(x.dtype).itemsize
    n_blk, t_blk = _pick_tiles(N, F, T, itemsize)
    grid = (pl.cdiv(N, n_blk), pl.cdiv(T, t_blk))
    vmem_limit = min(int(_vmem_capacity_bytes() * 0.75), 96 * 1024 * 1024)

    out3 = pl.pallas_call(
        _cnn_layernorm_kernel,
        out_shape=jax.ShapeDtypeStruct((N, F, T), x.dtype),
        grid_spec=pltpu.PrefetchScalarGridSpec(
            num_scalar_prefetch=0,
            grid=grid,
            in_specs=[
                pl.BlockSpec((n_blk, F, t_blk), lambda i, j: (i, 0, j)),
                pl.BlockSpec((F, 1), lambda i, j: (0, 0)),
                pl.BlockSpec((F, 1), lambda i, j: (0, 0)),
            ],
            out_specs=pl.BlockSpec((n_blk, F, t_blk), lambda i, j: (i, 0, j)),
        ),
        compiler_params=pltpu.CompilerParams(
            dimension_semantics=("parallel", "parallel"),
            vmem_limit_bytes=vmem_limit,
        ),
    )(x3, g2, b2)

    return out3.reshape(B, C, F, T)


def _reference(x, gamma, beta):
    # Pure-JAX reference mirroring the PyTorch forward exactly.
    xt = jnp.swapaxes(x, 2, 3)                        # (B, C, T, F)
    mean = jnp.mean(xt, axis=-1, keepdims=True)
    var = jnp.mean((xt - mean) ** 2, axis=-1, keepdims=True)
    y = (xt - mean) / jnp.sqrt(var + EPS) * gamma + beta
    return jnp.swapaxes(y, 2, 3)                      # (B, C, F, T)


if __name__ == "__main__":
    B, C, F, T = 2, 4, 16, 16  # batch, channels, n_feats, time

    key = jax.random.PRNGKey(0)
    kx, kg, kb = jax.random.split(key, 3)
    x = jax.random.normal(kx, (B, C, F, T), dtype=jnp.float32)
    # LayerNorm params: deterministic, non-trivial values (init'd in-script).
    gamma = 1.0 + 0.1 * jax.random.normal(kg, (F,), dtype=jnp.float32)
    beta = 0.1 * jax.random.normal(kb, (F,), dtype=jnp.float32)

    out = cnn_layer_norm(x, gamma, beta)
    out = jax.block_until_ready(out)

    ref = _reference(x, gamma, beta)
    assert out.shape == (B, C, F, T)
    assert jnp.allclose(out, ref, atol=1e-5, rtol=1e-5), "mismatch vs reference"
    print("KERNEL_OK")
</pallas_src>

<mosaic_0001>
module attributes {stable_mosaic.version = 11 : i64} {
  func.func @_cnn_layernorm_kernel(%arg0: i32, %arg1: i32, %arg2: memref<4x16x16xf32, #tpu.memory_space<vmem>>, %arg3: memref<16x1xf32, #tpu.memory_space<vmem>>, %arg4: memref<16x1xf32, #tpu.memory_space<vmem>>, %arg5: memref<4x16x16xf32, #tpu.memory_space<vmem>>) attributes {dimension_semantics = [#tpu.dimension_semantics<parallel>, #tpu.dimension_semantics<parallel>], iteration_bounds = array<i64: 2, 1>, scalar_prefetch = 0 : i64, scratch_operands = 0 : i64, tpu.core_type = #tpu.core_type<tc>, window_params = [{transform_indices = @transform_0, window_bounds = array<i64: 4, 16, 16>}, {pipeline_mode = #tpu.pipeline_mode<synchronous>, transform_indices = @transform_1, window_bounds = array<i64: 16, 1>}, {pipeline_mode = #tpu.pipeline_mode<synchronous>, transform_indices = @transform_2, window_bounds = array<i64: 16, 1>}, {transform_indices = @transform_3, window_bounds = array<i64: 4, 16, 16>}]} {
    %c0 = arith.constant 0 : index
    %c0_0 = arith.constant 0 : index
    %c0_1 = arith.constant 0 : index
    %0 = vector.load %arg2[%c0, %c0_0, %c0_1] : memref<4x16x16xf32, #tpu.memory_space<vmem>>, vector<4x16x16xf32>
    %cst = arith.constant dense<0.000000e+00> : vector<4x16xf32>
    %1 = vector.multi_reduction <add>, %0, %cst [1] : vector<4x16x16xf32> to vector<4x16xf32>
    %2 = vector.shape_cast %1 : vector<4x16xf32> to vector<4x1x16xf32>
    %cst_2 = arith.constant 1.600000e+01 : f32
    %3 = vector.broadcast %cst_2 : f32 to vector<4x1x16xf32>
    %4 = arith.divf %2, %3 : vector<4x1x16xf32>
    %5 = vector.broadcast %4 : vector<4x1x16xf32> to vector<4x16x16xf32>
    %6 = arith.subf %0, %5 : vector<4x16x16xf32>
    %7 = arith.mulf %6, %6 : vector<4x16x16xf32>
    %cst_3 = arith.constant dense<0.000000e+00> : vector<4x16xf32>
    %8 = vector.multi_reduction <add>, %7, %cst_3 [1] : vector<4x16x16xf32> to vector<4x16xf32>
    %9 = vector.shape_cast %8 : vector<4x16xf32> to vector<4x1x16xf32>
    %cst_4 = arith.constant 1.600000e+01 : f32
    %10 = vector.broadcast %cst_4 : f32 to vector<4x1x16xf32>
    %11 = arith.divf %9, %10 : vector<4x1x16xf32>
    %cst_5 = arith.constant 9.99999974E-6 : f32
    %12 = vector.broadcast %cst_5 : f32 to vector<4x1x16xf32>
    %13 = arith.addf %11, %12 : vector<4x1x16xf32>
    %14 = math.rsqrt %13 : vector<4x1x16xf32>
    %c0_6 = arith.constant 0 : index
    %c0_7 = arith.constant 0 : index
    %15 = vector.load %arg3[%c0_6, %c0_7] : memref<16x1xf32, #tpu.memory_space<vmem>>, vector<16x1xf32>
    %16 = vector.shape_cast %15 : vector<16x1xf32> to vector<1x16x1xf32>
    %c0_8 = arith.constant 0 : index
    %c0_9 = arith.constant 0 : index
    %17 = vector.load %arg4[%c0_8, %c0_9] : memref<16x1xf32, #tpu.memory_space<vmem>>, vector<16x1xf32>
    %18 = vector.shape_cast %17 : vector<16x1xf32> to vector<1x16x1xf32>
    %19 = vector.broadcast %14 : vector<4x1x16xf32> to vector<4x16x16xf32>
    %20 = arith.mulf %6, %19 : vector<4x16x16xf32>
    %21 = vector.broadcast %16 : vector<1x16x1xf32> to vector<4x16x16xf32>
    %22 = arith.mulf %20, %21 : vector<4x16x16xf32>
    %23 = vector.broadcast %18 : vector<1x16x1xf32> to vector<4x16x16xf32>
    %24 = arith.addf %22, %23 : vector<4x16x16xf32>
    %c0_10 = arith.constant 0 : index
    %c0_11 = arith.constant 0 : index
    %c0_12 = arith.constant 0 : index
    %25 = vector.load %arg5[%c0_10, %c0_11, %c0_12] : memref<4x16x16xf32, #tpu.memory_space<vmem>>, vector<4x16x16xf32>
    tpu.vector_store %arg5[%c0_10, %c0_11, %c0_12], %24 {strides = array<i32>} : memref<4x16x16xf32, #tpu.memory_space<vmem>>, vector<4x16x16xf32>,
    return
  }
  func.func @transform_0(%arg0: i32, %arg1: i32) -> (i32, i32, i32) {
    %c0_i32 = arith.constant 0 : i32
    %c0_i32_0 = arith.constant 0 : i32
    return %arg0, %c0_i32, %arg1 : i32, i32, i32
  }
  func.func @transform_1(%arg0: i32, %arg1: i32) -> (i32, i32) {
    %c0_i32 = arith.constant 0 : i32
    %c0_i32_0 = arith.constant 0 : i32
    %c0_i32_1 = arith.constant 0 : i32
    return %c0_i32, %c0_i32_0 : i32, i32
  }
  func.func @transform_2(%arg0: i32, %arg1: i32) -> (i32, i32) {
    %c0_i32 = arith.constant 0 : i32
    %c0_i32_0 = arith.constant 0 : i32
    %c0_i32_1 = arith.constant 0 : i32
    return %c0_i32, %c0_i32_0 : i32, i32
  }
  func.func @transform_3(%arg0: i32, %arg1: i32) -> (i32, i32, i32) {
    %c0_i32 = arith.constant 0 : i32
    %c0_i32_0 = arith.constant 0 : i32
    return %arg0, %c0_i32, %arg1 : i32, i32, i32
  }
}

</mosaic_0001>

<bundles_post_ra>
// kernel: tpu_custom_call.1
= control target key start
LH: loop header
LB: loop body
LE: loop exit
PB: predicated region body
PF: predicated region fallthrough
CT: control target
= control target key end

     0   :  { %8 = vsyncpa [#allocation3], 0  ;;  %s974_s0 = inlined_call_operand.hbm [shape: f32[8,16,16], index: 0, kind: input, shape index: {}]   ;;  %s975_s1 = inlined_call_operand.vmem [shape: f32[16,1], index: 1, kind: input, shape index: {}]   ;;  %s976_s2 = inlined_call_operand.vmem [shape: f32[16,1], index: 2, kind: input, shape index: {}]   ;;  %s977_s3 = inlined_call_operand.hbm [shape: f32[8,16,16], index: 3, kind: output, shape index: {}]  }
   0x1   :  { %10 = vsyncpa [#allocation3 + $0x1], 0 }
   0x2   :  { %11 = vsyncpa [#allocation4], 0 }
   0x3   :  { %13 = vsyncpa [#allocation4 + $0x1], 0  ;;  %s719_s12 = smov 0   ;;  %s721_s13 = smov 0  }
   0x4   :  { %s723_s14 = smov 0   ;;  %s725_s15 = smov 0  }
   0x5   :  { %s727_s16 = smov 0   ;;  %s729_s17 = smov 0  }
   0x6 LB: > { %s480_s18 = sadd.s32 4294967295, %s690_s17   ;;  %s481_s19 = sadd.s32 4294967294, %s690_s17   ;;  %s690_s17 = sphi %s729_s17, %s19_s17   ;;  %s686_s16 = sphi %s727_s16, %s992_s16   ;;  %s682_s15 = sphi %s725_s15, %s991_s15   ;;  %s678_s14 = sphi %s723_s14, %s990_s14   ;;  %s674_s13 = sphi %s721_s13, %s989_s13   ;;  %s670_s12 = sphi %s719_s12, %s988_s12  }
   0x7   : > { %s31_s20 = sadd.s32 1, %s686_s16  ;;  %s40_s21 = sadd.s32 1, %s678_s14 }
   0x8   : > { %p33_p0 = scmp.ge.s32.totalorder %s31_s20, 2  ;;  %p47_p1 = scmp.ne.s32.totalorder %s678_s14, %s674_s13 }
   0x9   : > { %p48_p2 = scmp.eq.s32.totalorder %s690_s17, 0  ;;  %p53_p3 = scmp.ne.s32.totalorder %s674_s13, %s670_s12 }
   0xa   : > { %s994_s20 = smov (%p33_p0, %s31_s20), 0  ;;  %p54_p5 = scmp.eq.s32.totalorder %s480_s18, 0 }
   0xb   : > { %p760_p4 = por %p48_p2, %p47_p1  ;;  %s35_s23 = ssub.s32 %s686_s16, %s994_s20 }
   0xc   : > { %p121_p6 = scmp.eq.s32.totalorder %s480_s18, 1  ;;  %p38_p7 = scmp.eq.s32.totalorder %s35_s23, 0 }
   0xd   : > { %p766_p8 = por %p54_p5, %p53_p3  ;;  %p127_p10 = scmp.eq.s32.totalorder %s481_s19, 1 }
   0xe   : > { %p770_p9 = por %p121_p6, %p47_p1  ;;  %p513_p13 = scmp.lt.s32.totalorder %s690_s17, 2 }
   0xf   : > { %s775_s26 = scalar_select %p38_p7, %s678_s14, %s40_s21  }
  0x10   : > { %s981_s25 = scalar_select %p770_p9, 1, 0 }
  0x11   : > { %p777_p11 = por %p127_p10, %p53_p3  ;;  %s153_s28 = sand.u32 1, %s678_s14  }
  0x12   : > { %s484_s29 = sshll.u32 %s153_s28, 6  ;;  %s498_s30 = sshll.u32 %s686_s16, 10 }
  0x13   : > { %s982_s27 = scalar_select %p777_p11, 1, 0 }
  0x14   : > { %s788_s6 = scalar_lea.hbm %s974_s0, %s498_s30  ;;  %s157_s7 = scalar_lea.vmem [#allocation2], %s484_s29 }
  0x15   : > { %s166_s8 = sshll.u32 %s157_s7, 4  ;;  %p794_p0 = pnand %p513_p13, %p760_p4  ;;  %s790_s8 = int_to_ptr.vmem [resolvable:$true] %s166_s8 }
  0x16   : > { %s799_s10 = scalar_lea.sflag [#allocation3], %s153_s28  ;;  %s578_s11 = scalar_lea.hbm %s788_s6, 1024 }
  0x17   : > { %p579_p2 = scmp.ne.s32.totalorder %s788_s6, %s578_s11  ;;  %p580_p3 = pneg %p794_p0 }
  0x18   : > { %s583_s21 = scalar_lea.hbm %s974_s0, 2048  ;;  %p584_p4 = scmp.lt.u32.totalorder %s788_s6, %s974_s0 }
  0x19   : > { %p581_p5 = pnand %p580_p3, %p579_p2  ;;  %p585_p7 = scmp.lt.u32.totalorder %s583_s21, %s578_s11 }
  0x1a   : > { %p587_p13 = scmp.lt.u32.totalorder %s578_s11, %s788_s6 }
  0x1b   : > { %p582_p6 = pneg %p581_p5  ;;  %p586_p10 = por %p585_p7, %p584_p4 }
  0x1d   : > { %p588_p12 = por %p587_p13, %p586_p10 }
  0x1f   : > { %p589_p1 = pnand %p588_p12, %p582_p6 }
  0x21   : > { %592 = shalt.err (!%p589_p1)
}
  0x22   : > { %s593_s28 = scalar_lea.vmem %s790_s8, 1024  ;;  %s692_s29 = smov [#allocation2]  }
  0x23   : > { %p594_p2 = scmp.ne.s32.totalorder %s790_s8, %s593_s28  ;;  %s598_s30 = sshll.u32 %s692_s29, 4  ;;  %s599_s30 = int_to_ptr.vmem [resolvable:$false] %s598_s30 }
  0x24   : > { %s600_s4 = scalar_lea.vmem %s599_s30, 2048  ;;  %p601_p9 = scmp.lt.s32.totalorder %s790_s8, %s599_s30 }
  0x25   : > { %p596_p5 = pnand %p594_p2, %p580_p3  ;;  %p602_p4 = scmp.lt.s32.totalorder %s600_s4, %s593_s28 }
  0x27   : > { %p597_p11 = pneg %p596_p5  ;;  %p603_p7 = por %p602_p4, %p601_p9 }
  0x29   : > { %p604_p10 = pnand %p603_p7, %p597_p11 }
  0x2b   : > { %607 = shalt.err (!%p604_p10)
}
  0x2c   : > { %s693_s5 = smov 128   ;;  %s694_s7 = smov 8  }
  0x2d   : > { %508 = dma.hbm_to_vmem [thread:$0]  (!%p794_p0), %s788_s6, 1024, %s790_s8, %s799_s10, %s693_s5, %s693_s5, %s694_s7  }
  0x2e   : > { %p174_p12 = scmp.lt.s32.totalorder %s690_s17, 3  ;;  %p984_p1 = scmp.ge.s32.totalorder %s690_s17, 1 }
  0x30   : > { %p175_p3 = pnand %p984_p1, %p174_p12 }
  0x31   : > { %s831_s11 = sand.u32 (!%p175_p3), 1, %s674_s13  }
  0x32   : > { %178 = sbr.rel (%p175_p3) target bundleno = 212 (0xd4), region = 32  ;;  %s489_s18 = sshll.u32 (!%p175_p3), %s831_s11, 6 }
  0x33   : > { %s181_s19 = scalar_lea.sflag (!%p175_p3), [#allocation3], %s831_s11  ;;  %s184_s21 = scalar_lea.vmem (!%p175_p3), [#allocation2], %s489_s18 }
  0x39   : > { %661 = dma.done.wait (%p766_p8), %s181_s19, 1024  }
  0x3a   : > { %663 = vsyncadd (%p766_p8), %s181_s19, 4294966272  ;;  %v695_v0 = vmov 0   ;;  %v325_v1 = vld [vmem:[%s976_s2] sm:$0xff]  ;;  %v326_v3 = vld [vmem:[%s976_s2 + $0x8] sm:$0xff]  ;;  %vm217_vm0 = vcmask 130048   ;;  %s500_s29 = sshll.u32 %s682_s15, 10 }
  0x3b   : > { %569 = vset.pattern.permute.xlu1 %v695_v0  ;;  %568 = vset.pattern.permute.xlu0 %v695_v0  ;;  %v323_v2 = vld [vmem:[%s975_s1] sm:$0xff]  ;;  %v324_v4 = vld [vmem:[%s975_s1 + $0x8] sm:$0xff]  ;;  %v211_v7 = vld [vmem:[%s184_s21 + $0x10] sm:$0xff]  ;;  %s206_s30 = scalar_lea.vmem [#allocation5], %s489_s18  ;;  %s919_s7 = scalar_lea.hbm %s977_s3, %s500_s29 }
  0x3c   : > { %355 = vperm.xlu1 %569, %v325_v1   ;;  %337 = vperm.xlu0 %568, %v323_v2   ;;  %v209_v5 = vld [vmem:[%s184_s21] sm:$0xff]  ;;  %v210_v6 = vld [vmem:[%s184_s21 + $0x8] sm:$0xff]  ;;  %v212_v8 = vld [vmem:[%s184_s21 + $0x18] sm:$0xff]  ;;  %v227_v15 = vsel %vm217_vm0, %v211_v7, 0.0  ;;  %s395_s4 = sshll.u32 %s206_s30, 4  ;;  %s380_s18 = scalar_lea.sflag [#allocation4], %s831_s11  ;;  %s921_s4 = int_to_ptr.vmem [resolvable:$true] %s395_s4 }
  0x3d   : > { %v213_v9 = vld [vmem:[%s184_s21 + $0x20] sm:$0xff]  ;;  %v214_v10 = vld [vmem:[%s184_s21 + $0x28] sm:$0xff]  ;;  %v215_v11 = vld [vmem:[%s184_s21 + $0x30] sm:$0xff]  ;;  %v218_v13 = vsel %vm217_vm0, %v209_v5, 0.0  ;;  %v219_v14 = vsel %vm217_vm0, %v210_v6, 0.0  ;;  %v228_v16 = vsel %vm217_vm0, %v212_v8, 0.0 }
  0x3e   : > { %v216_v12 = vld [vmem:[%s184_s21 + $0x38] sm:$0xff]  ;;  %v236_v17 = vsel %vm217_vm0, %v213_v9, 0.0  ;;  %v237_v18 = vsel %vm217_vm0, %v214_v10, 0.0  ;;  %v220_v19 = vadd.f32 %v219_v14, %v218_v13  ;;  %v245_v20 = vsel %vm217_vm0, %v215_v11, 0.0  ;;  %s608_s19 = scalar_lea.vmem %s921_s4, 1024  ;;  %p985_p9 = scmp.ne.s32.totalorder %s981_s25, 0 }
  0x3f   : > { %v246_v21 = vsel %vm217_vm0, %v216_v12, 0.0  ;;  %v229_v22 = vadd.f32 %v228_v16, %v227_v15  ;;  %v238_v23 = vadd.f32 %v237_v18, %v236_v17  ;;  %p609_p8 = scmp.ne.s32.totalorder %s921_s4, %s608_s19  ;;  %s696_s21 = smov [#allocation5]  }
  0x40   : > { %360 = vperm.xlu1 %569, %v326_v3   ;;  %342 = vperm.xlu0 %568, %v324_v4   ;;  %v247_v24 = vadd.f32 %v246_v21, %v245_v20  ;;  %v221_v25 = vrot.slane %v220_v19, 4  ;;  %s612_s6 = sshll.u32 %s696_s21, 4  ;;  %s613_s6 = int_to_ptr.vmem [resolvable:$false] %s612_s6 }
  0x41   : > { %v230_v26 = vrot.slane %v229_v22, 4  ;;  %v239_v27 = vrot.slane %v238_v23, 4  ;;  %p610_p11 = pnand %p609_p8, %p985_p9  ;;  %s614_s8 = scalar_lea.vmem %s613_s6, 2048 }
  0x42   : > { %v248_v28 = vrot.slane %v247_v24, 4  ;;  %v222_v29 = vadd.f32 %v221_v25, %v220_v19  ;;  %p615_p6 = scmp.lt.s32.totalorder %s921_s4, %s613_s6  ;;  %p616_p13 = scmp.lt.s32.totalorder %s614_s8, %s608_s19 }
  0x43   : > { %v231_v30 = vadd.f32 %v230_v26, %v229_v22  ;;  %v240_v31 = vadd.f32 %v239_v27, %v238_v23  ;;  %p611_p0 = pneg %p610_p11 }
  0x44   : > { %v249_v32 = vadd.f32 %v248_v28, %v247_v24  ;;  %v223_v33 = vrot.slane %v222_v29, 2  ;;  %p617_p2 = por %p616_p13, %p615_p6 }
  0x45   : > { %v232_v34 = vrot.slane %v231_v30, 2  ;;  %v241_v35 = vrot.slane %v240_v31, 2 }
  0x46   : > { %v250_v36 = vrot.slane %v249_v32, 2  ;;  %v224_v37 = vadd.f32 %v223_v33, %v222_v29  ;;  %p618_p5 = pnand %p617_p2, %p611_p0 }
  0x47   : > { %v233_v38 = vadd.f32 %v232_v34, %v231_v30  ;;  %v242_v39 = vadd.f32 %v241_v35, %v240_v31 }
  0x48   : > { %v251_v40 = vadd.f32 %v250_v36, %v249_v32  ;;  %v225_v41 = vrot.slane %v224_v37, 1 }
  0x49   : > { %v234_v42 = vrot.slane %v233_v38, 1  ;;  %v243_v43 = vrot.slane %v242_v39, 1 }
  0x4a   : > { %v252_v44 = vrot.slane %v251_v40, 1  ;;  %v226_v45 = vadd.f32 %v225_v41, %v224_v37 }
  0x4b   : > { %v235_v46 = vadd.f32 %v234_v42, %v233_v38  ;;  %v244_v47 = vadd.f32 %v243_v43, %v242_v39 }
  0x4c   : > { %v253_v48 = vadd.f32 %v252_v44, %v251_v40  ;;  %v255_v49 = vmul.f32 0.0625, %v226_v45 }
  0x4d   : > { %v256_v50 = vmul.f32 0.0625, %v235_v46  ;;  %v257_v51 = vmul.f32 0.0625, %v244_v47 }
  0x4e   : > { %v258_v52 = vmul.f32 0.0625, %v253_v48  ;;  %v861_v53 = vsub.f32 %v209_v5, %v255_v49  ;;  %v863_v54 = vsub.f32 %v210_v6, %v255_v49 }
  0x4f   : > { %v865_v55 = vsub.f32 %v211_v7, %v256_v50  ;;  %v867_v56 = vsub.f32 %v212_v8, %v256_v50  ;;  %v869_v57 = vsub.f32 %v213_v9, %v257_v51  ;;  %v871_v58 = vsub.f32 %v214_v10, %v257_v51 }
  0x50   : > { %v873_v59 = vsub.f32 %v215_v11, %v258_v52  ;;  %v875_v60 = vsub.f32 %v216_v12, %v258_v52  ;;  %v267_v61 = vmul.f32 %v861_v53, %v861_v53  ;;  %v268_v62 = vmul.f32 %v863_v54, %v863_v54 }
  0x51   : > { %v269_v63 = vmul.f32 %v865_v55, %v865_v55  ;;  %v270_v0 = vmul.f32 %v867_v56, %v867_v56  ;;  %v271_v1 = vmul.f32 %v869_v57, %v869_v57  ;;  %v272_v2 = vmul.f32 %v871_v58, %v871_v58 }
  0x52   : > { %v273_v3 = vmul.f32 %v873_v59, %v873_v59  ;;  %v274_v4 = vmul.f32 %v875_v60, %v875_v60  ;;  %v275_v5 = vsel %vm217_vm0, %v267_v61, 0.0  ;;  %v276_v6 = vsel %vm217_vm0, %v268_v62, 0.0 }
  0x53   : > { %v284_v7 = vsel %vm217_vm0, %v269_v63, 0.0  ;;  %v285_v8 = vsel %vm217_vm0, %v270_v0, 0.0  ;;  %v293_v9 = vsel %vm217_vm0, %v271_v1, 0.0  ;;  %v294_v10 = vsel %vm217_vm0, %v272_v2, 0.0 }
  0x54   : > { %v277_v11 = vadd.f32 %v276_v6, %v275_v5  ;;  %v302_v12 = vsel %vm217_vm0, %v273_v3, 0.0  ;;  %v303_v13 = vsel %vm217_vm0, %v274_v4, 0.0  ;;  %v286_v14 = vadd.f32 %v285_v8, %v284_v7 }
  0x55   : > { %v295_v15 = vadd.f32 %v294_v10, %v293_v9  ;;  %v304_v16 = vadd.f32 %v303_v13, %v302_v12 }
  0x56   : > { %v278_v17 = vrot.slane %v277_v11, 4  ;;  %v287_v18 = vrot.slane %v286_v14, 4 }
  0x57   : > { %v296_v19 = vrot.slane %v295_v15, 4  ;;  %v305_v20 = vrot.slane %v304_v16, 4 }
  0x58   : > { %v279_v21 = vadd.f32 %v278_v17, %v277_v11  ;;  %v288_v22 = vadd.f32 %v287_v18, %v286_v14 }
  0x59   : > { %v297_v23 = vadd.f32 %v296_v19, %v295_v15  ;;  %v306_v24 = vadd.f32 %v305_v20, %v304_v16 }
  0x5a   : > { %v280_v25 = vrot.slane %v279_v21, 2  ;;  %v289_v26 = vrot.slane %v288_v22, 2 }
  0x5b   : > { %v298_v27 = vrot.slane %v297_v23, 2  ;;  %v307_v28 = vrot.slane %v306_v24, 2 }
  0x5c   : > { %v281_v29 = vadd.f32 %v280_v25, %v279_v21  ;;  %v290_v30 = vadd.f32 %v289_v26, %v288_v22 }
  0x5d   : > { %v299_v31 = vadd.f32 %v298_v27, %v297_v23  ;;  %v308_v32 = vadd.f32 %v307_v28, %v306_v24 }
  0x5e   : > { %v282_v33 = vrot.slane %v281_v29, 1  ;;  %v291_v34 = vrot.slane %v290_v30, 1 }
  0x5f   : > { %v300_v35 = vrot.slane %v299_v31, 1  ;;  %v309_v36 = vrot.slane %v308_v32, 1 }
  0x60   : > { %v283_v37 = vadd.f32 %v282_v33, %v281_v29  ;;  %v292_v38 = vadd.f32 %v291_v34, %v290_v30 }
  0x61   : > { %v301_v39 = vadd.f32 %v300_v35, %v299_v31  ;;  %v310_v40 = vadd.f32 %v309_v36, %v308_v32 }
  0x62   : > { %v311_v41 = vmul.f32 0.0625, %v283_v37  ;;  %v312_v42 = vmul.f32 0.0625, %v292_v38 }
  0x63   : > { %v313_v43 = vmul.f32 0.0625, %v301_v39  ;;  %v314_v44 = vmul.f32 0.0625, %v310_v40 }
  0x64   : > { %v315_v45 = vadd.f32 1e-05, %v311_v41  ;;  %v316_v46 = vadd.f32 1e-05, %v312_v42 }
  0x65   : > { %v317_v47 = vadd.f32 1e-05, %v313_v43  ;;  %v318_v48 = vadd.f32 1e-05, %v314_v44 }
  0x66   : > { %570 = vrsqrt.f32 %v315_v45 }
  0x67   : > { %572 = vrsqrt.f32 %v316_v46 }
  0x68   : > { %574 = vrsqrt.f32 %v317_v47 }
  0x69   : > { %576 = vrsqrt.f32 %v318_v48 }
  0x70   : > { %v571_v49 = vpop.eup %570 }
  0x71   : > { %v573_v50 = vpop.eup %572  ;;  %v327_v61 = vmul.f32 %v571_v49, %v861_v53  ;;  %v328_v3 = vmul.f32 %v571_v49, %v863_v54 }
  0x72   : > { %v575_v51 = vpop.eup %574  ;;  %v329_v62 = vmul.f32 %v573_v50, %v865_v55  ;;  %v330_v4 = vmul.f32 %v573_v50, %v867_v56 }
  0x73   : > { %v577_v52 = vpop.eup %576  ;;  %v331_v63 = vmul.f32 %v575_v51, %v869_v57  ;;  %v332_v5 = vmul.f32 %v575_v51, %v871_v58 }
  0x74   : > { %v333_v0 = vmul.f32 %v577_v52, %v873_v59  ;;  %v334_v6 = vmul.f32 %v577_v52, %v875_v60 }
  0xbb   : > { %v356_v1 = vpop.permute.xlu1 %355  ;;  %v338_v2 = vpop.permute.xlu0 %337 }
  0xbc   : > { %v345_v7 = vmul.f32 %v338_v2, %v327_v61  ;;  %v347_v53 = vmul.f32 %v338_v2, %v329_v62  ;;  %v349_v8 = vmul.f32 %v338_v2, %v331_v63  ;;  %v351_v55 = vmul.f32 %v338_v2, %v333_v0 }
  0xbe   : > { %v363_v9 = vadd.f32 %v356_v1, %v345_v7  ;;  %v365_v57 = vadd.f32 %v356_v1, %v347_v53  ;;  %v367_v10 = vadd.f32 %v356_v1, %v349_v8  ;;  %v369_v11 = vadd.f32 %v356_v1, %v351_v55 }
  0xbf   : > { %v343_v59 = vpop.permute.xlu0 %342  ;;  %v361_v12 = vpop.permute.xlu1 %360 }
  0xc0   : > { %371 = vst.msk [vmem:[%s206_s30] sm:$0xff] %vm217_vm0, %v363_v9  ;;  %373 = vst.msk [vmem:[%s206_s30 + $0x10] sm:$0xff] %vm217_vm0, %v365_v57  ;;  %v346_v54 = vmul.f32 %v343_v59, %v328_v3  ;;  %v348_v56 = vmul.f32 %v343_v59, %v330_v4  ;;  %v350_v58 = vmul.f32 %v343_v59, %v332_v5 }
  0xc1   : > { %375 = vst.msk [vmem:[%s206_s30 + $0x20] sm:$0xff] %vm217_vm0, %v367_v10  ;;  %377 = vst.msk [vmem:[%s206_s30 + $0x30] sm:$0xff] %vm217_vm0, %v369_v11  ;;  %v352_v60 = vmul.f32 %v343_v59, %v334_v6 }
  0xc2   : > { %v364_v13 = vadd.f32 %v361_v12, %v346_v54  ;;  %v366_v14 = vadd.f32 %v361_v12, %v348_v56  ;;  %v368_v15 = vadd.f32 %v361_v12, %v350_v58 }
  0xc3   : > { %v370_v16 = vadd.f32 %v361_v12, %v352_v60 }
  0xc4   : > { %372 = vst.msk [vmem:[%s206_s30 + $0x8] sm:$0xff] %vm217_vm0, %v364_v13  ;;  %374 = vst.msk [vmem:[%s206_s30 + $0x18] sm:$0xff] %vm217_vm0, %v366_v14 }
  0xc5   : > { %376 = vst.msk [vmem:[%s206_s30 + $0x28] sm:$0xff] %vm217_vm0, %v368_v15  ;;  %378 = vst.msk [vmem:[%s206_s30 + $0x38] sm:$0xff] %vm217_vm0, %v370_v16 }
  0xc6   : > { %621 = shalt.err (!%p618_p5)
}
  0xc7   : > { %s622_s9 = scalar_lea.hbm %s919_s7, 1024  ;;  %s626_s23 = scalar_lea.hbm %s977_s3, 2048 }
  0xc8   : > { %p623_p4 = scmp.ne.s32.totalorder %s919_s7, %s622_s9  ;;  %p627_p12 = scmp.lt.u32.totalorder %s919_s7, %s977_s3 }
  0xc9   : > { %p628_p1 = scmp.lt.u32.totalorder %s626_s23, %s622_s9  ;;  %p630_p8 = scmp.lt.u32.totalorder %s622_s9, %s919_s7 }
  0xca   : > { %p624_p7 = pnand %p623_p4, %p985_p9 }
  0xcb   : > { %p629_p3 = por %p628_p1, %p627_p12 }
  0xcc   : > { %p625_p10 = pneg %p624_p7 }
  0xcd   : > { %p631_p11 = por %p630_p8, %p629_p3 }
  0xcf   : > { %p632_p0 = pnand %p631_p11, %p625_p10 }
  0xd1   : > { %635 = shalt.err (!%p632_p0)
}
  0xd2   : > { %s697_s29 = smov 128   ;;  %s698_s30 = smov 8  }
  0xd3   : > { %503 = dma.vmem_to_hbm [thread:$0]  (%p985_p9), %s921_s4, 1024, %s919_s7, %s380_s18, %s697_s29, %s697_s29, %s698_s30  }
  0xd4 PF: > { %s410_s15 = sand.u32 1, %s670_s12   ;;  %p986_p6 = scmp.ne.s32.totalorder %s982_s27, 0 }
  0xd5   : > { %p987_p13 = scmp.ge.s32.totalorder %s690_s17, 2  ;;  %s411_s5 = scalar_lea.sflag [#allocation4], %s410_s15 }
  0xd7   : > { %p510_p2 = pnand %p987_p13, %p986_p6 }
  0xd9   : > { %665 = dma.done.wait (!%p510_p2), %s411_s5, 1024  }
  0xda   : > { %667 = vsyncadd (!%p510_p2), %s411_s5, 4294966272  ;;  %s19_s17 = sadd.s32 1, %s690_s17   ;;  %s988_s12 = smov %s674_s13 }
  0xdb   : > { %p16_p5 = scmp.ge.s32.totalorder %s19_s17, 4   ;;  %s989_s13 = smov %s678_s14 }
  0xdc   : > { %s990_s14 = smov %s775_s26  ;;  %s991_s15 = smov %s686_s16 }
  0xdd   : > { %s992_s16 = smov %s994_s20  ;;  %18 = sbr.rel (!%p16_p5) target bundleno = 6 (0x6), region = 77 }
  0xe4   :  { %416 = vsyncpa [#allocation3], 1 }
  0xe5   :  { %418 = vsyncpa [#allocation3 + $0x1], 1 }
  0xe6   :  { %419 = vsyncpa [#allocation4], 1 }
  0xe7   :  { %421 = vsyncpa [#allocation4 + $0x1], 1 }

</bundles_post_ra>
